<compile_context>
chip_gen: v7x
topology: tpu7x:2x2x1
jax: 0.10.0
libtpu: 0.0.40
codegen_flags: <defaults>
</compile_context>

<pallas_src>
import functools

import jax
import jax.numpy as jnp
from jax import lax
from jax.experimental import pallas as pl
from jax.experimental.pallas import tpu as pltpu

_LANES = 128      # vreg lane width
_TR_MAX = 8192    # max rows per input block (4 MiB f32 per block)
_ACC_R = 1024     # accumulator rows (0.5 MiB f32), independent of TR
_NC = 2           # leading "parallel" axis: 2 TensorCores on v7x, free elsewhere


def _rmse_kernel(yhat_ref, y_ref, out_ref, acc_ref, *, tr, acc_r, rows,
                 inner_len, n_full_blocks, padded_blocks):
    c = pl.program_id(0)               # core / outer split index
    i = pl.program_id(1)               # row-block index within the split
    b = c * inner_len + i              # global row-block index

    @pl.when(i == 0)
    def _init():
        acc_ref[...] = jnp.zeros_like(acc_ref)

    n_chunks = tr // acc_r
    rem_rows = tr - n_chunks * acc_r

    def accumulate(masked):
        # Valid rows left in this block (can be <= 0 for clamped empty blocks).
        remaining = (rows - b * tr) if masked else None

        def add_chunk(r0, nr):
            d = (yhat_ref[r0:r0 + nr, :].astype(jnp.float32)
                 - y_ref[r0:r0 + nr, :].astype(jnp.float32))
            sq = d * d
            if masked:
                row = lax.broadcasted_iota(jnp.int32, (nr, _LANES), 0) + r0
                # select (not multiply): rows read past the logical edge may
                # hold garbage/NaN and must be discarded, not scaled.
                sq = jnp.where(row < remaining, sq, jnp.float32(0.0))
            acc_ref[:nr, :] += sq

        for j in range(n_chunks):
            add_chunk(j * acc_r, acc_r)
        if rem_rows:
            add_chunk(n_chunks * acc_r, rem_rows)

    if n_full_blocks >= padded_blocks:
        accumulate(masked=False)            # every block fully valid
    elif n_full_blocks == 0:
        accumulate(masked=True)             # every block needs row masking
    else:
        @pl.when(b < n_full_blocks)
        def _interior():
            accumulate(masked=False)

        @pl.when(b >= n_full_blocks)
        def _boundary():
            accumulate(masked=True)

    # One cross-lane/sublane reduce per core, only on its last step; partial
    # sum is splat into this core's (8, 128) output tile.
    @pl.when(i == inner_len - 1)
    def _finalize():
        ssq = jnp.sum(acc_ref[...], keepdims=True)          # (1, 1)
        out_ref[...] = jnp.broadcast_to(ssq, (8, _LANES))


def rmse_loss(yhat: jax.Array, y: jax.Array, eps: float = 1e-07) -> jax.Array:
    assert yhat.shape == y.shape, "RMSELoss requires matching shapes"
    n_total = int(yhat.size)
    if n_total == 0:
        # torch.nn.MSELoss (mean) over an empty tensor is nan; keep semantics.
        return jnp.float32(float("nan"))

    flat_yhat = jnp.ravel(yhat)
    flat_y = jnp.ravel(y)

    rows = n_total // _LANES
    n_main = rows * _LANES
    tail = n_total - n_main

    # <128-element ragged tail handled in plain JAX: no full-array pad/copy
    # of the kernel inputs, and no element-level masking in the kernel.
    tail_ssq = jnp.float32(0.0)
    if tail:
        td = (flat_yhat[n_main:].astype(jnp.float32)
              - flat_y[n_main:].astype(jnp.float32))
        tail_ssq = jnp.sum(td * td)

    if rows == 0:
        return jnp.sqrt(tail_ssq / jnp.float32(n_total) + jnp.float32(eps))

    yhat2d = (flat_yhat[:n_main] if tail else flat_yhat).reshape(rows, _LANES)
    y2d = (flat_y[:n_main] if tail else flat_y).reshape(rows, _LANES)

    # Row-block geometry: as few blocks of <= _TR_MAX rows as possible,
    # rounded up to a multiple of the core-split factor so the grid stays
    # rectangular; block rows are sublane (8) aligned.
    nblocks = pl.cdiv(rows, _TR_MAX)
    nblocks = pl.cdiv(nblocks, _NC) * _NC
    tr = ((pl.cdiv(rows, nblocks) + 7) // 8) * 8
    inner_len = nblocks // _NC
    acc_r = min(tr, _ACC_R)
    n_full_blocks = rows // tr                 # blocks needing no masking
    last_block = pl.cdiv(rows, tr) - 1         # last block touching real data

    if nblocks > last_block + 1:
        # Some grid steps map past the data; clamp them onto the last real
        # block (their contribution is masked to exactly zero in-kernel).
        def in_map(c, i):
            return (jnp.minimum(c * inner_len + i, last_block), 0)
    else:
        def in_map(c, i):
            return (c * inner_len + i, 0)

    kernel = functools.partial(
        _rmse_kernel, tr=tr, acc_r=acc_r, rows=rows, inner_len=inner_len,
        n_full_blocks=n_full_blocks, padded_blocks=nblocks)

    out = pl.pallas_call(
        kernel,
        out_shape=jax.ShapeDtypeStruct((_NC * 8, _LANES), jnp.float32),
        grid_spec=pltpu.PrefetchScalarGridSpec(
            num_scalar_prefetch=0,
            grid=(_NC, inner_len),
            in_specs=[
                # (pipeline_mode=pl.Buffered(3) is a possible further sweep.)
                pl.BlockSpec((tr, _LANES), in_map),
                pl.BlockSpec((tr, _LANES), in_map),
            ],
            out_specs=pl.BlockSpec((8, _LANES), lambda c, i: (c, 0)),
            scratch_shapes=[pltpu.VMEM((acc_r, _LANES), jnp.float32)],
        ),
        compiler_params=pltpu.CompilerParams(
            # "parallel" outer axis -> split across the 2 TCs on v7x; it is a
            # plain serial outer loop on v5e/v6e (same total block count).
            dimension_semantics=("parallel", "arbitrary"),
            # 2 inputs x 2 buffers x (8192,128) f32 + 0.5 MiB acc ~= 17 MiB:
            # above v5e's 16 MiB scoped default, inside every gen's VMEM.
            vmem_limit_bytes=32 * 1024 * 1024),
    )(yhat2d, y2d)

    # Per-core partial sums live at rows 0 and 8 of the splat output tiles.
    ssq = jnp.sum(out[::8, 0]) + tail_ssq
    mse = ssq / jnp.float32(n_total)
    return jnp.sqrt(mse + jnp.float32(eps))


if __name__ == "__main__":
    key = jax.random.PRNGKey(0)
    k1, k2, k3, k4 = jax.random.split(key, 4)

    # Small regression-style output (NCHW): 2*4*16*16 = 2048 elements.
    x_shape = (2, 4, 16, 16)
    yhat = jax.random.normal(k1, x_shape, dtype=jnp.float32)
    y = jax.random.normal(k2, x_shape, dtype=jnp.float32)

    loss = rmse_loss(yhat, y)
    jax.block_until_ready(loss)
    ref = jnp.sqrt(jnp.mean((yhat - y) ** 2) + 1e-07)
    assert jnp.allclose(loss, ref, rtol=1e-5, atol=1e-6), (loss, ref)

    # Non-lane-aligned size exercises the wrapper tail path plus in-kernel
    # row masking and the clamped empty-block path.
    odd_shape = (2, 3, 7, 11)   # 462 elements
    yhat2 = jax.random.normal(k3, odd_shape, dtype=jnp.float32)
    y2 = jax.random.normal(k4, odd_shape, dtype=jnp.float32)
    loss2 = rmse_loss(yhat2, y2)
    jax.block_until_ready(loss2)
    ref2 = jnp.sqrt(jnp.mean((yhat2 - y2) ** 2) + 1e-07)
    assert jnp.allclose(loss2, ref2, rtol=1e-5, atol=1e-6), (loss2, ref2)

    print("KERNEL_OK")
</pallas_src>

<mosaic_0001>
module attributes {stable_mosaic.version = 11 : i64} {
  func.func @_rmse_kernel(%arg0: i32, %arg1: i32, %arg2: memref<8x128xf32, #tpu.memory_space<vmem>>, %arg3: memref<8x128xf32, #tpu.memory_space<vmem>>, %arg4: memref<8x128xf32, #tpu.memory_space<vmem>>, %arg5: memref<8x128xf32, #tpu.memory_space<vmem>>) attributes {dimension_semantics = [#tpu.dimension_semantics<parallel>, #tpu.dimension_semantics<arbitrary>], iteration_bounds = array<i64: 2, 1>, scalar_prefetch = 0 : i64, scratch_operands = 1 : i64, tpu.core_type = #tpu.core_type<tc>, window_params = [{transform_indices = @transform_0, window_bounds = array<i64: 8, 128>}, {transform_indices = @transform_1, window_bounds = array<i64: 8, 128>}, {transform_indices = @transform_2, window_bounds = array<i64: 8, 128>}]} {
    %c0_i32 = arith.constant 0 : i32
    %0 = arith.cmpi eq, %arg1, %c0_i32 : i32
    %1 = arith.extui %0 : i1 to i32
    %c0_i32_0 = arith.constant 0 : i32
    %2 = arith.cmpi ne, %1, %c0_i32_0 : i32
    scf.if %2 {
      %cst = arith.constant 0.000000e+00 : f32
      %13 = vector.broadcast %cst : f32 to vector<8x128xf32>
      %c0_10 = arith.constant 0 : index
      %c0_11 = arith.constant 0 : index
      %14 = vector.load %arg5[%c0_10, %c0_11] : memref<8x128xf32, #tpu.memory_space<vmem>>, vector<8x128xf32>
      tpu.vector_store %arg5[%c0_10, %c0_11], %13 {strides = array<i32>} : memref<8x128xf32, #tpu.memory_space<vmem>>, vector<8x128xf32>,
    } else {
    }
    %c0 = arith.constant 0 : index
    %c0_1 = arith.constant 0 : index
    %3 = vector.load %arg2[%c0, %c0_1] : memref<8x128xf32, #tpu.memory_space<vmem>>, vector<8x128xf32>
    %c0_2 = arith.constant 0 : index
    %c0_3 = arith.constant 0 : index
    %4 = vector.load %arg3[%c0_2, %c0_3] : memref<8x128xf32, #tpu.memory_space<vmem>>, vector<8x128xf32>
    %5 = arith.subf %3, %4 : vector<8x128xf32>
    %6 = arith.mulf %5, %5 : vector<8x128xf32>
    %c0_4 = arith.constant 0 : index
    %c0_5 = arith.constant 0 : index
    %7 = vector.load %arg5[%c0_4, %c0_5] : memref<8x128xf32, #tpu.memory_space<vmem>>, vector<8x128xf32>
    %8 = arith.addf %7, %6 : vector<8x128xf32>
    %c0_6 = arith.constant 0 : index
    %c0_7 = arith.constant 0 : index
    %9 = vector.load %arg5[%c0_6, %c0_7] : memref<8x128xf32, #tpu.memory_space<vmem>>, vector<8x128xf32>
    tpu.vector_store %arg5[%c0_6, %c0_7], %8 {strides = array<i32>} : memref<8x128xf32, #tpu.memory_space<vmem>>, vector<8x128xf32>,
    %c0_i32_8 = arith.constant 0 : i32
    %10 = arith.cmpi eq, %arg1, %c0_i32_8 : i32
    %11 = arith.extui %10 : i1 to i32
    %c0_i32_9 = arith.constant 0 : i32
    %12 = arith.cmpi ne, %11, %c0_i32_9 : i32
    scf.if %12 {
      %c0_10 = arith.constant 0 : index
      %c0_11 = arith.constant 0 : index
      %13 = vector.load %arg5[%c0_10, %c0_11] : memref<8x128xf32, #tpu.memory_space<vmem>>, vector<8x128xf32>
      %14 = vector.shape_cast %13 : vector<8x128xf32> to vector<1x8x128xf32>
      %cst = arith.constant dense<0.000000e+00> : vector<1xf32>
      %15 = vector.multi_reduction <add>, %14, %cst [1, 2] : vector<1x8x128xf32> to vector<1xf32>
      %16 = vector.shape_cast %15 : vector<1xf32> to vector<1x1x1xf32>
      %17 = vector.extract %16[0, 0, 0] : f32 from vector<1x1x1xf32>
      %18 = vector.broadcast %17 : f32 to vector<1x1xf32>
      %19 = vector.shape_cast %18 : vector<1x1xf32> to vector<1x1xf32>
      %20 = vector.broadcast %19 : vector<1x1xf32> to vector<8x128xf32>
      %c0_12 = arith.constant 0 : index
      %c0_13 = arith.constant 0 : index
      %21 = vector.load %arg4[%c0_12, %c0_13] : memref<8x128xf32, #tpu.memory_space<vmem>>, vector<8x128xf32>
      tpu.vector_store %arg4[%c0_12, %c0_13], %20 {strides = array<i32>} : memref<8x128xf32, #tpu.memory_space<vmem>>, vector<8x128xf32>,
    } else {
    }
    return
  }
  func.func @transform_0(%arg0: i32, %arg1: i32) -> (i32, i32) {
    %c1_i32 = arith.constant 1 : i32
    %0 = arith.muli %arg0, %c1_i32 : i32
    %1 = arith.addi %0, %arg1 : i32
    %c0_i32 = arith.constant 0 : i32
    %c0_i32_0 = arith.constant 0 : i32
    return %1, %c0_i32 : i32, i32
  }
  func.func @transform_1(%arg0: i32, %arg1: i32) -> (i32, i32) {
    %c1_i32 = arith.constant 1 : i32
    %0 = arith.muli %arg0, %c1_i32 : i32
    %1 = arith.addi %0, %arg1 : i32
    %c0_i32 = arith.constant 0 : i32
    %c0_i32_0 = arith.constant 0 : i32
    return %1, %c0_i32 : i32, i32
  }
  func.func @transform_2(%arg0: i32, %arg1: i32) -> (i32, i32) {
    %c0_i32 = arith.constant 0 : i32
    %c0_i32_0 = arith.constant 0 : i32
    return %arg0, %c0_i32 : i32, i32
  }
}

</mosaic_0001>

<bundles_post_ra>
// kernel: tpu_custom_call.1
= control target key start
LH: loop header
LB: loop body
LE: loop exit
PB: predicated region body
PF: predicated region fallthrough
CT: control target
= control target key end

     0   :  { %7 = vsyncpa [#allocation4], 0  ;;  %s836_s0 = inlined_call_operand.hbm [shape: f32[16,128], index: 0, kind: input, shape index: {}]   ;;  %s837_s1 = inlined_call_operand.hbm [shape: f32[16,128], index: 1, kind: input, shape index: {}]   ;;  %s838_s2 = inlined_call_operand.hbm [shape: f32[16,128], index: 2, kind: output, shape index: {}]  }
   0x1   :  { %9 = vsyncpa [#allocation4 + $0x1], 0 }
   0x2   :  { %10 = vsyncpa [#allocation7], 0 }
   0x3   :  { %12 = vsyncpa [#allocation7 + $0x1], 0 }
   0x4   :  { %13 = vsyncpa [#allocation5], 0 }
   0x5   :  { %15 = vsyncpa [#allocation5 + $0x1], 0  ;;  %s611_s9 = smov 0   ;;  %s613_s10 = smov 0  }
   0x6   :  { %s615_s11 = smov 0   ;;  %s617_s12 = smov 0  }
   0x7   :  { %s619_s13 = smov 0   ;;  %s621_s14 = smov 0  }
   0x8 LB: > { %s360_s15 = sadd.s32 4294967295, %s591_s14   ;;  %s361_s16 = sadd.s32 4294967294, %s591_s14   ;;  %s591_s14 = sphi %s621_s14, %s21_s14   ;;  %s587_s13 = sphi %s619_s13, %s858_s13   ;;  %s583_s12 = sphi %s617_s12, %s857_s12   ;;  %s579_s11 = sphi %s615_s11, %s856_s11   ;;  %s575_s10 = sphi %s613_s10, %s855_s10   ;;  %s571_s9 = sphi %s611_s9, %s854_s9  }
   0x9   : > { %s33_s17 = sadd.s32 1, %s587_s13  ;;  %s42_s18 = sadd.s32 1, %s579_s11 }
   0xa   : > { %p35_p0 = scmp.ge.s32.totalorder %s33_s17, 2  ;;  %p49_p1 = scmp.ne.s32.totalorder %s579_s11, %s575_s10 }
   0xb   : > { %p50_p2 = scmp.eq.s32.totalorder %s591_s14, 0  ;;  %p55_p3 = scmp.ne.s32.totalorder %s575_s10, %s571_s9 }
   0xc   : > { %s860_s17 = smov (%p35_p0, %s33_s17), 0  ;;  %p56_p5 = scmp.eq.s32.totalorder %s360_s15, 0 }
   0xd   : > { %p652_p4 = por %p50_p2, %p49_p1  ;;  %s39_s20 = ssub.s32 %s587_s13, %s860_s17 }
   0xe   : > { %p107_p6 = scmp.eq.s32.totalorder %s360_s15, 1  ;;  %p40_p7 = scmp.eq.s32.totalorder %s39_s20, 0 }
   0xf   : > { %p658_p8 = por %p56_p5, %p55_p3  ;;  %p113_p10 = scmp.eq.s32.totalorder %s361_s16, 1 }
  0x10   : > { %p662_p9 = por %p107_p6, %p49_p1  ;;  %p395_p13 = scmp.lt.s32.totalorder %s591_s14, 2 }
  0x11   : > { %s842_s21 = scalar_select %p658_p8, 1, 0 }
  0x12   : > { %s843_s22 = scalar_select %p662_p9, 1, 0 }
  0x13   : > { %s667_s23 = scalar_select %p40_p7, %s579_s11, %s42_s18  }
  0x14   : > { %p669_p11 = por %p113_p10, %p55_p3  ;;  %s676_s25 = sand.u32 1, %s579_s11  }
  0x15   : > { %s364_s26 = sshll.u32 %s676_s25, 3  ;;  %s365_s27 = sshll.u32 %s587_s13, 7 }
  0x16   : > { %s844_s24 = scalar_select %p669_p11, 1, 0 }
  0x17   : > { %s685_s30 = scalar_lea.hbm %s836_s0, %s365_s27  ;;  %s137_s3 = scalar_lea.vmem [#allocation3], %s364_s26 }
  0x18   : > { %s145_s4 = sshll.u32 %s137_s3, 4  ;;  %p693_p0 = pnand %p395_p13, %p652_p4  ;;  %s689_s4 = int_to_ptr.vmem [resolvable:$true] %s145_s4 }
  0x19   : > { %s134_s6 = scalar_lea.sflag [#allocation4], %s676_s25  ;;  %s445_s7 = scalar_lea.hbm %s685_s30, 128 }
  0x1a   : > { %p446_p3 = scmp.ne.s32.totalorder %s685_s30, %s445_s7  ;;  %p447_p5 = pneg %p693_p0 }
  0x1b   : > { %s450_s16 = scalar_lea.hbm %s836_s0, 256  ;;  %p451_p4 = scmp.lt.u32.totalorder %s685_s30, %s836_s0 }
  0x1c   : > { %p448_p6 = pnand %p447_p5, %p446_p3  ;;  %p452_p10 = scmp.lt.u32.totalorder %s450_s16, %s445_s7 }
  0x1d   : > { %p454_p12 = scmp.lt.u32.totalorder %s445_s7, %s685_s30 }
  0x1e   : > { %p449_p7 = pneg %p448_p6  ;;  %p453_p13 = por %p452_p10, %p451_p4 }
  0x20   : > { %p455_p1 = por %p454_p12, %p453_p13 }
  0x22   : > { %p456_p2 = pnand %p455_p1, %p449_p7 }
  0x24   : > { %459 = shalt.err (!%p456_p2)
}
  0x25   : > { %s460_s20 = scalar_lea.vmem %s689_s4, 128  ;;  %s593_s28 = smov [#allocation3]  }
  0x26   : > { %p461_p3 = scmp.ne.s32.totalorder %s689_s4, %s460_s20  ;;  %s465_s29 = sshll.u32 %s593_s28, 4  ;;  %s466_s29 = int_to_ptr.vmem [resolvable:$false] %s465_s29 }
  0x27   : > { %s467_s3 = scalar_lea.vmem %s466_s29, 256  ;;  %p468_p9 = scmp.lt.s32.totalorder %s689_s4, %s466_s29 }
  0x28   : > { %p463_p6 = pnand %p461_p3, %p447_p5  ;;  %p469_p4 = scmp.lt.s32.totalorder %s467_s3, %s460_s20 }
  0x2a   : > { %p464_p11 = pneg %p463_p6  ;;  %p470_p10 = por %p469_p4, %p468_p9 }
  0x2c   : > { %p471_p12 = pnand %p470_p10, %p464_p11 }
  0x2e   : > { %474 = shalt.err (!%p471_p12)
}
  0x2f   : > { %387 = dma.hbm_to_vmem [thread:$0]  (!%p693_p0), %s685_s30, 128, %s689_s4, %s134_s6  }
  0x30   : > { %p846_p1 = scmp.lt.s32.totalorder %s591_s14, 3  ;;  %p847_p2 = scmp.ge.s32.totalorder %s591_s14, 1 }
  0x31   : > { %s738_s16 = scalar_lea.hbm %s837_s1, %s365_s27  ;;  %s156_s18 = scalar_lea.vmem [#allocation6], %s364_s26 }
  0x32   : > { %p729_p7 = pnand %p847_p2, %p846_p1  ;;  %s164_s19 = sshll.u32 %s156_s18, 4  ;;  %s165_s19 = int_to_ptr.vmem [resolvable:$true] %s164_s19 }
  0x33   : > { %s153_s30 = scalar_lea.sflag [#allocation7], %s676_s25  ;;  %s475_s4 = scalar_lea.hbm %s738_s16, 128 }
  0x34   : > { %s848_s7 = scalar_select %p729_p7, 1, 0 }
  0x35   : > { %p476_p9 = scmp.ne.s32.totalorder %s738_s16, %s475_s4  ;;  %s480_s27 = scalar_lea.hbm %s837_s1, 256 }
  0x36   : > { %p481_p3 = scmp.lt.u32.totalorder %s738_s16, %s837_s1  ;;  %p482_p6 = scmp.lt.u32.totalorder %s480_s27, %s475_s4 }
  0x37   : > { %p478_p11 = pnand %p476_p9, %p447_p5  ;;  %p484_p10 = scmp.lt.u32.totalorder %s475_s4, %s738_s16 }
  0x38   : > { %p483_p4 = por %p482_p6, %p481_p3 }
  0x39   : > { %p479_p13 = pneg %p478_p11 }
  0x3a   : > { %p485_p12 = por %p484_p10, %p483_p4 }
  0x3c   : > { %p486_p1 = pnand %p485_p12, %p479_p13 }
  0x3e   : > { %489 = shalt.err (!%p486_p1)
}
  0x3f   : > { %s490_s25 = scalar_lea.vmem %s165_s19, 128  ;;  %s594_s26 = smov [#allocation6]  }
  0x40   : > { %p491_p2 = scmp.ne.s32.totalorder %s165_s19, %s490_s25  ;;  %s495_s3 = sshll.u32 %s594_s26, 4  ;;  %s496_s3 = int_to_ptr.vmem [resolvable:$false] %s495_s3 }
  0x41   : > { %s497_s8 = scalar_lea.vmem %s496_s3, 256  ;;  %p498_p8 = scmp.lt.s32.totalorder %s165_s19, %s496_s3 }
  0x42   : > { %p493_p9 = pnand %p491_p2, %p447_p5  ;;  %p499_p7 = scmp.lt.s32.totalorder %s497_s8, %s490_s25 }
  0x44   : > { %p494_p11 = pneg %p493_p9  ;;  %p500_p3 = por %p499_p7, %p498_p8 }
  0x46   : > { %p501_p6 = pnand %p500_p3, %p494_p11 }
  0x48   : > { %504 = shalt.err (!%p501_p6)
}
  0x49   : > { %390 = dma.hbm_to_vmem [thread:$0]  (!%p693_p0), %s738_s16, 128, %s165_s19, %s153_s30  }
  0x4a   : > { %p849_p13 = scmp.ne.s32.totalorder %s848_s7, 0 }
  0x4b   : > { %s765_s15 = sand.u32 (!%p849_p13), 1, %s575_s10   ;;  %p850_p8 = scmp.ne.s32.totalorder (!%p849_p13), %s842_s21, 0 }
  0x4c   : > { %173 = sbr.rel (%p849_p13) target bundleno = 310 (0x136), region = 28  ;;  %s768_s18 = sshll.u32 (!%p849_p13), %s765_s15, 3 }
  0x4d   : > { %s176_s4 = scalar_lea.sflag (!%p849_p13), [#allocation4], %s765_s15  ;;  %s179_s6 = scalar_lea.vmem (!%p849_p13), [#allocation3], %s768_s18 }
  0x53   : > { %558 = dma.done.wait (%p850_p8), %s176_s4, 128  }
  0x54   : > { %560 = vsyncadd (%p850_p8), %s176_s4, 4294967168  ;;  %s185_s5 = scalar_lea.sflag [#allocation7], %s765_s15  ;;  %s188_s7 = scalar_lea.vmem [#allocation6], %s768_s18 }
  0x55   : > { %562 = dma.done.wait (%p850_p8), %s185_s5, 128  }
  0x56   : > { %564 = vsyncadd (%p850_p8), %s185_s5, 4294967168  ;;  %v221_v0 = vld [vmem:[%s179_s6] sm:$0xff]  ;;  %v222_v1 = vld [vmem:[%s188_s7] sm:$0xff]  ;;  %s213_s16 = scalar_lea.vmem [#allocation8], %s768_s18  ;;  %s373_s19 = sshll.u32 %s583_s12, 7 }
  0x57   : > { %v223_v2 = vsub.f32 %v221_v0, %v222_v1  ;;  %s257_s21 = sshll.u32 %s213_s16, 4  ;;  %s789_s28 = scalar_lea.hbm %s838_s2, %s373_s19  ;;  %s784_s21 = int_to_ptr.vmem [resolvable:$true] %s257_s21 }
  0x58   : > { %s244_s29 = scalar_lea.sflag [#allocation5], %s765_s15  ;;  %s505_s25 = scalar_lea.vmem %s784_s21, 128 }
  0x59   : > { %v224_v3 = vmul.f32 %v223_v2, %v223_v2  ;;  %p506_p0 = scmp.ne.s32.totalorder %s784_s21, %s505_s25  ;;  %p851_p5 = scmp.ne.s32.totalorder %s843_s22, 0 }
  0x5a   : > { %s595_s12 = smov [#allocation8]  }
  0x5b   : > { %232 = vadd.xlane.f32.xlu0 %v224_v3  ;;  %p507_p7 = pnand %p506_p0, %p851_p5  ;;  %s509_s26 = sshll.u32 %s595_s12, 4  ;;  %s510_s26 = int_to_ptr.vmem [resolvable:$false] %s509_s26 }
  0x5c   : > { %s511_s3 = scalar_lea.vmem %s510_s26, 256  ;;  %p512_p10 = scmp.lt.s32.totalorder %s784_s21, %s510_s26 }
  0x5d   : > { %p508_p4 = pneg %p507_p7  ;;  %p513_p12 = scmp.lt.s32.totalorder %s511_s3, %s505_s25 }
  0x5f   : > { %p514_p1 = por %p513_p12, %p512_p10 }
  0x61   : > { %p515_p2 = pnand %p514_p1, %p508_p4 }
  0xe8   : > { %v233_v4 = vpop.xlane.xlu0 %232 }
  0xe9   : > { %v234_v5 = vrot.slane %v233_v4, 4 }
  0xeb   : > { %v235_v6 = vadd.f32 %v234_v5, %v233_v4 }
  0xed   : > { %v236_v7 = vrot.slane %v235_v6, 2 }
  0xef   : > { %v237_v8 = vadd.f32 %v236_v7, %v235_v6 }
  0xf1   : > { %v238_v9 = vrot.slane %v237_v8, 1 }
  0xf3   : > { %v239_v10 = vadd.f32 %v238_v9, %v237_v8 }
  0xf5   : > { %376 = vpush %v239_v10 }
 0x126   : > { %s377_s30 = spop %376 }
 0x127   : > { %v241_v11 = vstv %s377_s30 }
 0x128   : > { %242 = vst [vmem:[%s213_s16] sm:$0xff] %v241_v11 }
 0x129   : > { %518 = shalt.err (!%p515_p2)
}
 0x12a   : > { %s519_s8 = scalar_lea.hbm %s789_s28, 128  ;;  %s523_s4 = scalar_lea.hbm %s838_s2, 256 }
 0x12b   : > { %p520_p9 = scmp.ne.s32.totalorder %s789_s28, %s519_s8  ;;  %p524_p6 = scmp.lt.u32.totalorder %s789_s28, %s838_s2 }
 0x12c   : > { %p525_p13 = scmp.lt.u32.totalorder %s523_s4, %s519_s8  ;;  %p527_p0 = scmp.lt.u32.totalorder %s519_s8, %s789_s28 }
 0x12d   : > { %p521_p11 = pnand %p520_p9, %p851_p5 }
 0x12e   : > { %p526_p8 = por %p525_p13, %p524_p6 }
 0x12f   : > { %p522_p3 = pneg %p521_p11 }
 0x130   : > { %p528_p7 = por %p527_p0, %p526_p8 }
 0x132   : > { %p529_p4 = pnand %p528_p7, %p522_p3 }
 0x134   : > { %532 = shalt.err (!%p529_p4)
}
 0x135   : > { %382 = dma.vmem_to_hbm [thread:$0]  (%p851_p5), %s784_s21, 128, %s789_s28, %s244_s29  }
 0x136 PF: > { %s269_s7 = sand.u32 1, %s571_s9   ;;  %p852_p10 = scmp.ne.s32.totalorder %s844_s24, 0 }
 0x137   : > { %p853_p12 = scmp.ge.s32.totalorder %s591_s14, 2  ;;  %s270_s16 = scalar_lea.sflag [#allocation5], %s269_s7 }
 0x139   : > { %p392_p1 = pnand %p853_p12, %p852_p10 }
 0x13b   : > { %566 = dma.done.wait (!%p392_p1), %s270_s16, 128  }
 0x13c   : > { %568 = vsyncadd (!%p392_p1), %s270_s16, 4294967168  ;;  %s21_s14 = sadd.s32 1, %s591_s14   ;;  %s854_s9 = smov %s575_s10 }
 0x13d   : > { %p18_p2 = scmp.ge.s32.totalorder %s21_s14, 4   ;;  %s855_s10 = smov %s579_s11 }
 0x13e   : > { %s856_s11 = smov %s667_s23  ;;  %s857_s12 = smov %s587_s13 }
 0x13f   : > { %s858_s13 = smov %s860_s17  ;;  %20 = sbr.rel (!%p18_p2) target bundleno = 8 (0x8), region = 94 }
 0x146   :  { %275 = vsyncpa [#allocation4], 1 }
 0x147   :  { %277 = vsyncpa [#allocation4 + $0x1], 1 }
 0x148   :  { %278 = vsyncpa [#allocation7], 1 }
 0x149   :  { %280 = vsyncpa [#allocation7 + $0x1], 1 }
 0x14a   :  { %281 = vsyncpa [#allocation5], 1 }
 0x14b   :  { %283 = vsyncpa [#allocation5 + $0x1], 1 }

</bundles_post_ra>
